<compile_context>
chip_gen: v7x
topology: tpu7x:2x2x1
jax: 0.10.0
libtpu: 0.0.40
codegen_flags: <defaults>
</compile_context>

<pallas_src>
import math

import jax
import jax.numpy as jnp
from jax.experimental import pallas as pl
from jax.experimental.pallas import tpu as pltpu


# ---------------------------------------------------------------------------
# Helpers
# ---------------------------------------------------------------------------
def _roll_left_lanes(x, s):
    """y[..., j] = x[..., (j + s) % n]  (left circular roll along last axis).

    Uses the XLU rotate (pltpu.roll) when the operand is vreg-aligned,
    otherwise a static slice+concat that always lowers.
    """
    n = x.shape[-1]
    s = int(s) % n
    if s == 0:
        return x
    if x.ndim == 2 and n % 128 == 0 and x.shape[0] % 8 == 0:
        # pltpu.roll == jnp.roll semantics; jnp.roll(x, n - s) == jnp.roll(x, -s).
        # TODO(synk): re-validate the roll direction on silicon at aligned L.
        return pltpu.roll(x, n - s, axis=1)
    lo = jax.lax.slice_in_dim(x, s, n, axis=x.ndim - 1)
    hi = jax.lax.slice_in_dim(x, 0, s, axis=x.ndim - 1)
    return jnp.concatenate([lo, hi], axis=x.ndim - 1)


def _pick_block_batches(B, per_batch_bytes, budget=24 << 20, cap=8):
    """Largest divisor of B that fits the VMEM budget.  Prefer an even number
    of grid steps so the 'parallel' batch axis splits evenly over the two
    TensorCores on v7x (no-op on v5e/v6e)."""
    cap = max(1, min(cap, budget // max(per_batch_bytes, 1)))
    divisors = [d for d in range(1, min(B, cap) + 1) if B % d == 0]
    even = [d for d in divisors if (B // d) % 2 == 0]
    return max(even) if even else max(divisors)


def _vmem_limit(block_bytes):
    # Explicit scoped-VMEM limit: margin over the estimated live set, clamped
    # so it stays within every generation's budget (v7x: 64 MiB physical).
    return int(min(max(32 << 20, 2 * block_bytes), 48 << 20))


# ---------------------------------------------------------------------------
# Kernel 1a (default path): head/channel-mean autocorrelation.
#   gp[s, t] = sum_c k[b,s,c] * q[b,t,c]                      (MXU, f32 acc)
#   mean[b, tau] = (1/C) * sum_s gp[s, (s + tau) % L]         (halving fold)
# The full (B, C, L) corr tensor is never materialized.
# ---------------------------------------------------------------------------
def _make_mean_corr_kernel(L, C, Bt):
    inv_c = 1.0 / float(C)

    def kernel(q_ref, k_ref, mean_ref):
        for bi in range(Bt):
            q = q_ref[bi]                                     # (L, C)
            k = k_ref[bi]                                     # (L, C)
            gp = jax.lax.dot_general(
                k, q, dimension_numbers=(((1,), (1,)), ((), ())),
                preferred_element_type=jnp.float32)           # (L, L) f32
            # Wrapped-diagonal sums D[tau] = sum_s gp[s, (s+tau)%L] via a
            # halving fold.  Invariant: D = sum_p leftroll(a[p, :], p) over the
            # current row count r.  Each level folds the top half onto the
            # bottom half after rolling it left by `keep` (no masks/selects).
            a = gp
            r = L
            while r > 1:
                h = r // 2
                keep = r - h
                top = jax.lax.slice_in_dim(a, keep, r, axis=0)   # (h, L)
                low = jax.lax.slice_in_dim(a, 0, h, axis=0)
                low = low + _roll_left_lanes(top, keep)
                if keep > h:                                     # odd r: keep middle row
                    mid = jax.lax.slice_in_dim(a, h, keep, axis=0)
                    a = jnp.concatenate([low, mid], axis=0)
                else:
                    a = low
                r = keep
            mean_ref[bi] = a * inv_c                             # (1, L)

    return kernel


def _mean_corr_pallas(q3, k3):
    B, L, C = q3.shape
    isz = q3.dtype.itemsize
    per_batch = 2 * 2 * L * C * isz + 3 * L * L * 4   # dbl-buffered q,k + fold temps
    Bt = _pick_block_batches(B, per_batch)
    vmem_limit = _vmem_limit(Bt * per_batch + 2 * Bt * L * 4)
    return pl.pallas_call(
        _make_mean_corr_kernel(L, C, Bt),
        out_shape=jax.ShapeDtypeStruct((B, 1, L), jnp.float32),
        grid=(B // Bt,),
        in_specs=[pl.BlockSpec((Bt, L, C), lambda g: (g, 0, 0)),
                  pl.BlockSpec((Bt, L, C), lambda g: (g, 0, 0))],
        out_specs=pl.BlockSpec((Bt, 1, L), lambda g: (g, 0, 0)),
        compiler_params=pltpu.CompilerParams(
            dimension_semantics=("parallel",),
            vmem_limit_bytes=vmem_limit),
    )(q3, k3)


# ---------------------------------------------------------------------------
# Kernel 1b (output_attention=True only): full per-channel autocorrelation
#   corr[b, tau, c] = sum_t q[b,t,c] * k[b,(t - tau)%L, c]
# tau-tiled (TT rows per store) using a doubled-k scratch + dynamic slices,
# channel mean accumulated on the fly.
# ---------------------------------------------------------------------------
def _make_corr_full_kernel(L, C, TT):
    inv_c = 1.0 / float(C)

    def kernel(q_ref, k_ref, corr_ref, mean_ref, k2_ref):
        q = q_ref[0].astype(jnp.float32)                     # (L, C)
        k = k_ref[0]                                         # (L, C)
        k2_ref[pl.ds(0, L), :] = k                           # doubled k
        k2_ref[pl.ds(L, L), :] = k

        def tile(j, carry):
            t0 = pl.multiple_of(j * TT, TT)
            rows = []
            for r in range(TT):
                # tau = t0 + r ; k[(t - tau) % L] == k2[t + (L - tau)]
                sl = k2_ref[pl.ds(L - t0 - r, L), :].astype(jnp.float32)
                rows.append(jnp.sum(q * sl, axis=0, keepdims=True))  # (1, C)
            block = jnp.concatenate(rows, axis=0)            # (TT, C) f32
            corr_ref[0, pl.ds(t0, TT), :] = block
            mean_ref[0, pl.ds(t0, TT), :] = (
                jnp.sum(block, axis=1, keepdims=True) * inv_c)
            return carry

        jax.lax.fori_loop(0, L // TT, tile, 0, unroll=True)

    return kernel


def _corr_full_pallas(q3, k3):
    B, L, C = q3.shape
    TT = 8 if (L % 8 == 0 and L >= 8) else 1
    isz = q3.dtype.itemsize
    per_batch = 2 * 2 * L * C * isz + 2 * L * C * 4 + 2 * L * C * isz
    vmem_limit = _vmem_limit(per_batch)
    return pl.pallas_call(
        _make_corr_full_kernel(L, C, TT),
        out_shape=(jax.ShapeDtypeStruct((B, L, C), jnp.float32),
                   jax.ShapeDtypeStruct((B, L, 1), jnp.float32)),
        grid=(B,),
        in_specs=[pl.BlockSpec((1, L, C), lambda b: (b, 0, 0)),
                  pl.BlockSpec((1, L, C), lambda b: (b, 0, 0))],
        out_specs=(pl.BlockSpec((1, L, C), lambda b: (b, 0, 0)),
                   pl.BlockSpec((1, L, 1), lambda b: (b, 0, 0))),
        scratch_shapes=[pltpu.VMEM((2 * L, C), q3.dtype)],
        compiler_params=pltpu.CompilerParams(
            dimension_semantics=("parallel",),
            vmem_limit_bytes=vmem_limit),
    )(q3, k3)


# ---------------------------------------------------------------------------
# Kernel 2: time-delay aggregation (training branch).
#   out[b, t, c] = sum_i w[b, i] * v[b, (t + d_i) % L, c]
# Implemented as K dynamic-start slices over a doubled-v VMEM scratch,
# accumulated in f32 (no (L,L) shift matrix, no L^2 VALU work).
# ---------------------------------------------------------------------------
def _make_agg_kernel(L, HD, K, Bt):
    def kernel(delay_ref, w_ref, v_ref, out_ref, v2_ref):
        # delay_ref: SMEM (K,) int32 delays in [0, L)
        # w_ref:     SMEM (B, K) f32 softmax weights
        b0 = pl.program_id(0) * Bt
        for bi in range(Bt):
            v = v_ref[bi]                                    # (L, HD)
            v2_ref[pl.ds(0, L), :] = v                       # doubled v
            v2_ref[pl.ds(L, L), :] = v
            acc = jnp.zeros((L, HD), jnp.float32)
            for i in range(K):
                d = delay_ref[i]
                w = w_ref[b0 + bi, i]
                acc = acc + w * v2_ref[pl.ds(d, L), :].astype(jnp.float32)
            out_ref[bi] = acc

    return kernel


def _agg_pallas(delays, weights, v3):
    B, L, HD = v3.shape
    K = delays.shape[0]
    isz = v3.dtype.itemsize
    per_batch = 2 * L * HD * isz + 2 * L * HD * 4            # v (dbl) + out (dbl)
    Bt = _pick_block_batches(B, per_batch)
    vmem_limit = _vmem_limit(Bt * per_batch + 2 * L * HD * isz + L * HD * 4)
    return pl.pallas_call(
        _make_agg_kernel(L, HD, K, Bt),
        out_shape=jax.ShapeDtypeStruct((B, L, HD), jnp.float32),
        grid=(B // Bt,),
        in_specs=[pl.BlockSpec(memory_space=pltpu.MemorySpace.SMEM),
                  pl.BlockSpec(memory_space=pltpu.MemorySpace.SMEM),
                  pl.BlockSpec((Bt, L, HD), lambda g: (g, 0, 0))],
        out_specs=pl.BlockSpec((Bt, L, HD), lambda g: (g, 0, 0)),
        scratch_shapes=[pltpu.VMEM((2 * L, HD), v3.dtype)],
        compiler_params=pltpu.CompilerParams(
            dimension_semantics=("parallel",),
            vmem_limit_bytes=vmem_limit),
    )(delays, weights, v3)


# ---------------------------------------------------------------------------
# Module forward (glue: reshapes / tiny top-k + softmax; hot paths in kernels)
# ---------------------------------------------------------------------------
def autocorrelation_forward(queries, keys, values, attn_mask=None, factor=1,
                            output_attention=False,
                            compute_dtype=jnp.bfloat16):
    """Forward pass of Autoformer's AutoCorrelation (training branch).

    compute_dtype is the MXU / DMA operand dtype (bf16 by default; all
    accumulation stays f32).  Pass jnp.float32 for an exact match with the
    FFT-based reference (bf16 rounding could, in principle, flip near-tied
    top-k delay selections).
    """
    del attn_mask  # unused in the reference forward
    queries = queries.astype(jnp.float32)
    keys = keys.astype(jnp.float32)
    values = values.astype(jnp.float32)
    B, L, H, E = queries.shape
    _, S, _, D = values.shape
    if L > S:
        values = jnp.concatenate(
            [values, jnp.zeros((B, L - S, H, D), jnp.float32)], axis=1)
        keys = jnp.concatenate(
            [keys, jnp.zeros((B, L - S, H, E), jnp.float32)], axis=1)
    else:
        values = values[:, :L]
        keys = keys[:, :L]

    # Lane-dense (B, L, C) layout: free reshapes, no transposes.
    q3 = queries.reshape(B, L, H * E).astype(compute_dtype)
    k3 = keys.reshape(B, L, H * E).astype(compute_dtype)
    v3 = values.reshape(B, L, H * D).astype(compute_dtype)

    # Phase 1: period-based dependency discovery.
    if output_attention:
        corr3, mean3 = _corr_full_pallas(q3, k3)             # (B,L,C), (B,L,1)
        mean_value = mean3[:, :, 0]                          # (B, L)
    else:
        corr3 = None
        mean_value = _mean_corr_pallas(q3, k3)[:, 0, :]      # (B, L)

    # Global top-k delay selection over an (L,)-vector: tiny, done as JAX glue.
    top_k = int(factor * math.log(L))
    _, index = jax.lax.top_k(jnp.mean(mean_value, axis=0), top_k)
    index = index.astype(jnp.int32)                          # (top_k,)
    weights = jnp.take(mean_value, index, axis=1)            # (B, top_k)
    tmp_corr = jax.nn.softmax(weights, axis=-1)              # (B, top_k)

    # Phase 2: time-delay aggregation (training branch of the reference).
    agg = _agg_pallas(index, tmp_corr.astype(jnp.float32), v3)   # (B, L, H*D)
    V = agg.reshape(B, L, H, D)

    if output_attention:
        return V, corr3.reshape(B, L, H, E)
    return V, None


# ---------------------------------------------------------------------------
# Pure-JAX reference (mirrors the torch code, FFT-based) for correctness check
# ---------------------------------------------------------------------------
def autocorrelation_ref(queries, keys, values, factor=1):
    B, L, H, E = queries.shape
    _, S, _, D = values.shape
    if L > S:
        values = jnp.concatenate(
            [values, jnp.zeros((B, L - S, H, D), jnp.float32)], axis=1)
        keys = jnp.concatenate(
            [keys, jnp.zeros((B, L - S, H, E), jnp.float32)], axis=1)
    else:
        values = values[:, :L]
        keys = keys[:, :L]
    qp = jnp.transpose(queries, (0, 2, 3, 1))
    kp = jnp.transpose(keys, (0, 2, 3, 1))
    vp = jnp.transpose(values, (0, 2, 3, 1))
    q_fft = jnp.fft.rfft(qp, axis=-1)
    k_fft = jnp.fft.rfft(kp, axis=-1)
    corr = jnp.fft.irfft(q_fft * jnp.conj(k_fft), n=L, axis=-1)
    top_k = int(factor * math.log(L))
    mean_value = jnp.mean(jnp.mean(corr, axis=1), axis=1)     # (B, L)
    _, index = jax.lax.top_k(jnp.mean(mean_value, axis=0), top_k)
    weights = jnp.stack([mean_value[:, index[i]] for i in range(top_k)], axis=-1)
    tmp_corr = jax.nn.softmax(weights, axis=-1)
    delays_agg = jnp.zeros_like(vp)
    for i in range(top_k):
        pattern = jnp.roll(vp, -index[i], axis=-1)
        delays_agg = delays_agg + pattern * tmp_corr[:, i][:, None, None, None]
    V = jnp.transpose(delays_agg, (0, 3, 1, 2))
    return V, None


if __name__ == "__main__":
    key = jax.random.PRNGKey(0)
    B, L, S, H, E, D = 2, 16, 16, 4, 32, 32
    kq, kk, kv = jax.random.split(key, 3)
    queries = jax.random.normal(kq, (B, L, H, E), jnp.float32)
    keys = jax.random.normal(kk, (B, S, H, E), jnp.float32)
    values = jax.random.normal(kv, (B, S, H, D), jnp.float32)

    # Default (production) path: bf16 MXU operands, f32 accumulation.  Only a
    # loose sanity check here (bf16 rounding can in principle flip near-tied
    # top-k delays); the exact-algorithm check is the f32 run below, which
    # exercises identical kernel code.
    V_bf16, attn = autocorrelation_forward(queries, keys, values,
                                           attn_mask=None, factor=1,
                                           output_attention=False)
    V_bf16 = jax.block_until_ready(V_bf16)
    assert V_bf16.shape == (B, L, H, D), V_bf16.shape
    assert attn is None
    assert bool(jnp.all(jnp.isfinite(V_bf16)))

    # Exact f32 path vs the FFT-based reference (tight tolerance).
    V_f32, _ = autocorrelation_forward(queries, keys, values, attn_mask=None,
                                       factor=1, output_attention=False,
                                       compute_dtype=jnp.float32)
    V_f32 = jax.block_until_ready(V_f32)
    V_ref, _ = autocorrelation_ref(queries, keys, values, factor=1)
    max_err = float(jnp.max(jnp.abs(V_f32 - V_ref)))
    assert jnp.allclose(V_f32, V_ref, atol=1e-3, rtol=1e-3), max_err
    print("KERNEL_OK")
</pallas_src>

<mosaic_0001>
module attributes {stable_mosaic.version = 11 : i64} {
  func.func @kernel(%arg0: i32, %arg1: memref<1x16x128xbf16, #tpu.memory_space<vmem>>, %arg2: memref<1x16x128xbf16, #tpu.memory_space<vmem>>, %arg3: memref<1x1x16xf32, #tpu.memory_space<vmem>>) attributes {dimension_semantics = [#tpu.dimension_semantics<parallel>], iteration_bounds = array<i64: 2>, scalar_prefetch = 0 : i64, scratch_operands = 0 : i64, tpu.core_type = #tpu.core_type<tc>, window_params = [{transform_indices = @transform_0, window_bounds = array<i64: 1, 16, 128>}, {transform_indices = @transform_1, window_bounds = array<i64: 1, 16, 128>}, {transform_indices = @transform_2, window_bounds = array<i64: 1, 1, 16>}]} {
    %c0 = arith.constant 0 : index
    %c0_0 = arith.constant 0 : index
    %c0_1 = arith.constant 0 : index
    %0 = vector.load %arg1[%c0, %c0_0, %c0_1] : memref<1x16x128xbf16, #tpu.memory_space<vmem>>, vector<1x16x128xbf16>
    %1 = vector.shape_cast %0 : vector<1x16x128xbf16> to vector<16x128xbf16>
    %c0_2 = arith.constant 0 : index
    %c0_3 = arith.constant 0 : index
    %c0_4 = arith.constant 0 : index
    %2 = vector.load %arg2[%c0_2, %c0_3, %c0_4] : memref<1x16x128xbf16, #tpu.memory_space<vmem>>, vector<1x16x128xbf16>
    %3 = vector.shape_cast %2 : vector<1x16x128xbf16> to vector<16x128xbf16>
    %cst = arith.constant dense<0.000000e+00> : vector<16x16xf32>
    %4 = tpu.matmul %3, %1, %cst {dimension_numbers = #tpu.dot_dimension_numbers<[1], [1], [0], [0], [0, 0, 1, 0], [], []>} : vector<16x128xbf16>, vector<16x128xbf16>, vector<16x16xf32> -> vector<16x16xf32>
    %5 = vector.extract_strided_slice %4 {offsets = [8, 0], sizes = [8, 16], strides = [1, 1]} : vector<16x16xf32> to vector<8x16xf32>
    %6 = vector.extract_strided_slice %4 {offsets = [0, 0], sizes = [8, 16], strides = [1, 1]} : vector<16x16xf32> to vector<8x16xf32>
    %7 = vector.extract_strided_slice %5 {offsets = [0, 8], sizes = [8, 8], strides = [1, 1]} : vector<8x16xf32> to vector<8x8xf32>
    %8 = vector.extract_strided_slice %5 {offsets = [0, 0], sizes = [8, 8], strides = [1, 1]} : vector<8x16xf32> to vector<8x8xf32>
    %9 = tpu.concatenate %7, %8 in 1 : vector<8x8xf32>, vector<8x8xf32> -> vector<8x16xf32>
    %10 = arith.addf %6, %9 : vector<8x16xf32>
    %11 = vector.extract_strided_slice %10 {offsets = [4, 0], sizes = [4, 16], strides = [1, 1]} : vector<8x16xf32> to vector<4x16xf32>
    %12 = vector.extract_strided_slice %10 {offsets = [0, 0], sizes = [4, 16], strides = [1, 1]} : vector<8x16xf32> to vector<4x16xf32>
    %13 = vector.extract_strided_slice %11 {offsets = [0, 4], sizes = [4, 12], strides = [1, 1]} : vector<4x16xf32> to vector<4x12xf32>
    %14 = vector.extract_strided_slice %11 {offsets = [0, 0], sizes = [4, 4], strides = [1, 1]} : vector<4x16xf32> to vector<4x4xf32>
    %15 = tpu.concatenate %13, %14 in 1 : vector<4x12xf32>, vector<4x4xf32> -> vector<4x16xf32>
    %16 = arith.addf %12, %15 : vector<4x16xf32>
    %17 = vector.extract_strided_slice %16 {offsets = [2, 0], sizes = [2, 16], strides = [1, 1]} : vector<4x16xf32> to vector<2x16xf32>
    %18 = vector.extract_strided_slice %16 {offsets = [0, 0], sizes = [2, 16], strides = [1, 1]} : vector<4x16xf32> to vector<2x16xf32>
    %19 = vector.extract_strided_slice %17 {offsets = [0, 2], sizes = [2, 14], strides = [1, 1]} : vector<2x16xf32> to vector<2x14xf32>
    %20 = vector.extract_strided_slice %17 {offsets = [0, 0], sizes = [2, 2], strides = [1, 1]} : vector<2x16xf32> to vector<2x2xf32>
    %21 = tpu.concatenate %19, %20 in 1 : vector<2x14xf32>, vector<2x2xf32> -> vector<2x16xf32>
    %22 = arith.addf %18, %21 : vector<2x16xf32>
    %23 = vector.extract_strided_slice %22 {offsets = [1, 0], sizes = [1, 16], strides = [1, 1]} : vector<2x16xf32> to vector<1x16xf32>
    %24 = vector.extract_strided_slice %22 {offsets = [0, 0], sizes = [1, 16], strides = [1, 1]} : vector<2x16xf32> to vector<1x16xf32>
    %25 = vector.extract_strided_slice %23 {offsets = [0, 1], sizes = [1, 15], strides = [1, 1]} : vector<1x16xf32> to vector<1x15xf32>
    %26 = vector.extract_strided_slice %23 {offsets = [0, 0], sizes = [1, 1], strides = [1, 1]} : vector<1x16xf32> to vector<1x1xf32>
    %27 = tpu.concatenate %25, %26 in 1 : vector<1x15xf32>, vector<1x1xf32> -> vector<1x16xf32>
    %28 = arith.addf %24, %27 : vector<1x16xf32>
    %cst_5 = arith.constant 7.812500e-03 : f32
    %29 = vector.broadcast %cst_5 : f32 to vector<1x16xf32>
    %30 = arith.mulf %28, %29 : vector<1x16xf32>
    %c0_6 = arith.constant 0 : index
    %c0_7 = arith.constant 0 : index
    %c0_8 = arith.constant 0 : index
    %31 = vector.load %arg3[%c0_6, %c0_7, %c0_8] : memref<1x1x16xf32, #tpu.memory_space<vmem>>, vector<1x1x16xf32>
    %32 = vector.shape_cast %31 : vector<1x1x16xf32> to vector<1x16xf32>
    %33 = vector.shape_cast %30 : vector<1x16xf32> to vector<1x1x16xf32>
    tpu.vector_store %arg3[%c0_6, %c0_7, %c0_8], %33 {strides = array<i32>} : memref<1x1x16xf32, #tpu.memory_space<vmem>>, vector<1x1x16xf32>,
    return
  }
  func.func @transform_0(%arg0: i32) -> (i32, i32, i32) {
    %c0_i32 = arith.constant 0 : i32
    %c0_i32_0 = arith.constant 0 : i32
    %c0_i32_1 = arith.constant 0 : i32
    return %arg0, %c0_i32, %c0_i32_0 : i32, i32, i32
  }
  func.func @transform_1(%arg0: i32) -> (i32, i32, i32) {
    %c0_i32 = arith.constant 0 : i32
    %c0_i32_0 = arith.constant 0 : i32
    %c0_i32_1 = arith.constant 0 : i32
    return %arg0, %c0_i32, %c0_i32_0 : i32, i32, i32
  }
  func.func @transform_2(%arg0: i32) -> (i32, i32, i32) {
    %c0_i32 = arith.constant 0 : i32
    %c0_i32_0 = arith.constant 0 : i32
    %c0_i32_1 = arith.constant 0 : i32
    return %arg0, %c0_i32, %c0_i32_0 : i32, i32, i32
  }
}

</mosaic_0001>

<bundles_post_ra>
// kernel: tpu_custom_call.1
= control target key start
LH: loop header
LB: loop body
LE: loop exit
PB: predicated region body
PF: predicated region fallthrough
CT: control target
= control target key end

     0   :  { %7 = vsyncpa [#allocation3], 0  ;;  %s889_s0 = inlined_call_operand.hbm [shape: bf16[2,16,128], index: 0, kind: input, shape index: {}]   ;;  %s890_s1 = inlined_call_operand.hbm [shape: bf16[2,16,128], index: 1, kind: input, shape index: {}]   ;;  %s891_s2 = inlined_call_operand.hbm [shape: f32[2,1,16], index: 2, kind: output, shape index: {}]  }
   0x1   :  { %9 = vsyncpa [#allocation3 + $0x1], 0 }
   0x2   :  { %10 = vsyncpa [#allocation6], 0 }
   0x3   :  { %12 = vsyncpa [#allocation6 + $0x1], 0 }
   0x4   :  { %13 = vsyncpa [#allocation4], 0 }
   0x5   :  { %15 = vsyncpa [#allocation4 + $0x1], 0  ;;  %s667_s9 = smov 0   ;;  %s669_s10 = smov 0  }
   0x6   :  { %s671_s11 = smov 0   ;;  %s673_s12 = smov 0  }
   0x7 LB: > { %s688_s13 = sadd.s32 4294967295, %s635_s12   ;;  %s413_s14 = sadd.s32 4294967294, %s635_s12   ;;  %s635_s12 = sphi %s673_s12, %s907_s12   ;;  %s631_s11 = sphi %s671_s11, %s906_s11   ;;  %s627_s10 = sphi %s669_s10, %s905_s10   ;;  %s623_s9 = sphi %s667_s9, %s904_s9  }
   0x8   : > { %s692_s15 = sadd.s32 1, %s635_s12   ;;  %s28_s16 = sadd.s32 1, %s631_s11 }
   0x9   : > { %s25_s17 = ssub.s32 %s635_s12, %s692_s15  ;;  %p35_p0 = scmp.ne.s32.totalorder %s631_s11, %s627_s10 }
   0xa   : > { %p26_p1 = scmp.eq.s32.totalorder %s25_s17, 0  ;;  %p36_p2 = scmp.eq.s32.totalorder %s635_s12, 0 }
   0xb   : > { %p41_p3 = scmp.ne.s32.totalorder %s627_s10, %s623_s9  ;;  %p42_p4 = scmp.eq.s32.totalorder %s688_s13, 0 }
   0xc   : > { %s704_s18 = scalar_select %p26_p1, %s631_s11, %s28_s16  }
   0xd   : > { %p706_p5 = por %p36_p2, %p35_p0  ;;  %p710_p6 = por %p42_p4, %p41_p3 }
   0xe   : > { %p91_p7 = scmp.eq.s32.totalorder %s688_s13, 1  ;;  %p97_p8 = scmp.eq.s32.totalorder %s413_s14, 1 }
   0xf   : > { %s895_s20 = scalar_select %p710_p6, 1, 0 }
  0x10   : > { %p457_p10 = scmp.lt.s32.totalorder %s635_s12, 2  ;;  %p717_p11 = por %p91_p7, %p35_p0 }
  0x11   : > { %p721_p12 = por %p97_p8, %p41_p3  ;;  %s726_s23 = sand.u32 1, %s631_s11  }
  0x12   : > { %s896_s21 = scalar_select %p717_p11, 1, 0 }
  0x13   : > { %s897_s22 = scalar_select %p721_p12, 1, 0 }
  0x14   : > { %s430_s24 = sshll.u32 %s635_s12, 7  ;;  %s416_s25 = sshll.u32 %s726_s23, 3 }
  0x15   : > { %s735_s28 = scalar_lea.hbm %s889_s0, %s430_s24  ;;  %s121_s29 = scalar_lea.vmem [#allocation2], %s416_s25 }
  0x16   : > { %s128_s30 = sshll.u32 %s121_s29, 4  ;;  %p741_p13 = pnand %p457_p10, %p706_p5  ;;  %s745_s30 = int_to_ptr.vmem [resolvable:$true] %s128_s30 }
  0x17   : > { %s118_s4 = scalar_lea.sflag [#allocation3], %s726_s23  ;;  %s505_s5 = scalar_lea.hbm %s735_s28, 128 }
  0x18   : > { %p506_p0 = scmp.ne.s32.totalorder %s735_s28, %s505_s5  ;;  %p507_p1 = pneg %p741_p13 }
  0x19   : > { %s510_s8 = scalar_lea.hbm %s889_s0, 256  ;;  %p511_p4 = scmp.lt.u32.totalorder %s735_s28, %s889_s0 }
  0x1a   : > { %p508_p2 = pnand %p507_p1, %p506_p0  ;;  %p512_p5 = scmp.lt.u32.totalorder %s510_s8, %s505_s5 }
  0x1b   : > { %p514_p8 = scmp.lt.u32.totalorder %s505_s5, %s735_s28 }
  0x1c   : > { %p509_p3 = pneg %p508_p2  ;;  %p513_p7 = por %p512_p5, %p511_p4 }
  0x1e   : > { %p515_p10 = por %p514_p8, %p513_p7 }
  0x20   : > { %p516_p9 = pnand %p515_p10, %p509_p3 }
  0x22   : > { %519 = shalt.err (!%p516_p9)
}
  0x23   : > { %s520_s17 = scalar_lea.vmem %s745_s30, 128  ;;  %s637_s19 = smov [#allocation2]  }
  0x24   : > { %p521_p0 = scmp.ne.s32.totalorder %s745_s30, %s520_s17  ;;  %s525_s26 = sshll.u32 %s637_s19, 4  ;;  %s526_s26 = int_to_ptr.vmem [resolvable:$false] %s525_s26 }
  0x25   : > { %s527_s27 = scalar_lea.vmem %s526_s26, 256  ;;  %p528_p11 = scmp.lt.s32.totalorder %s745_s30, %s526_s26 }
  0x26   : > { %p523_p2 = pnand %p521_p0, %p507_p1  ;;  %p529_p4 = scmp.lt.s32.totalorder %s527_s27, %s520_s17 }
  0x28   : > { %p524_p12 = pneg %p523_p2  ;;  %p530_p5 = por %p529_p4, %p528_p11 }
  0x2a   : > { %p531_p7 = pnand %p530_p5, %p524_p12 }
  0x2c   : > { %534 = shalt.err (!%p531_p7)
}
  0x2d   : > { %s638_s29 = smov 64   ;;  %s639_s5 = smov 4  }
  0x2e   : > { %449 = dma.hbm_to_vmem [thread:$0]  (!%p741_p13), %s735_s28, 128, %s745_s30, %s118_s4, %s638_s29, %s638_s29, %s639_s5  }
  0x2f   : > { %p422_p9 = scmp.ge.s32.totalorder %s635_s12, 1  ;;  %p157_p11 = scmp.lt.s32.totalorder %s635_s12, 3 }
  0x30   : > { %s789_s14 = scalar_lea.hbm %s890_s1, %s430_s24  ;;  %s142_s16 = scalar_lea.vmem [#allocation5], %s416_s25 }
  0x31   : > { %p780_p12 = pnand %p422_p9, %p157_p11  ;;  %s149_s17 = sshll.u32 %s142_s16, 4  ;;  %s793_s17 = int_to_ptr.vmem [resolvable:$true] %s149_s17 }
  0x32   : > { %s139_s28 = scalar_lea.sflag [#allocation6], %s726_s23  ;;  %s535_s30 = scalar_lea.hbm %s789_s14, 128 }
  0x33   : > { %p536_p3 = scmp.ne.s32.totalorder %s789_s14, %s535_s30  ;;  %s540_s24 = scalar_lea.hbm %s890_s1, 256 }
  0x34   : > { %p541_p0 = scmp.lt.u32.totalorder %s789_s14, %s890_s1  ;;  %p542_p2 = scmp.lt.u32.totalorder %s540_s24, %s535_s30 }
  0x35   : > { %p538_p8 = pnand %p536_p3, %p507_p1  ;;  %p544_p5 = scmp.lt.u32.totalorder %s535_s30, %s789_s14 }
  0x36   : > { %p543_p4 = por %p542_p2, %p541_p0 }
  0x37   : > { %p539_p10 = pneg %p538_p8 }
  0x38   : > { %p545_p7 = por %p544_p5, %p543_p4 }
  0x3a   : > { %p546_p9 = pnand %p545_p7, %p539_p10 }
  0x3c   : > { %549 = shalt.err (!%p546_p9)
}
  0x3d   : > { %s550_s25 = scalar_lea.vmem %s793_s17, 128  ;;  %s640_s7 = smov [#allocation5]  }
  0x3e   : > { %p551_p11 = scmp.ne.s32.totalorder %s793_s17, %s550_s25  ;;  %s555_s8 = sshll.u32 %s640_s7, 4  ;;  %s556_s8 = int_to_ptr.vmem [resolvable:$false] %s555_s8 }
  0x3f   : > { %s557_s16 = scalar_lea.vmem %s556_s8, 256  ;;  %p558_p6 = scmp.lt.s32.totalorder %s793_s17, %s556_s8 }
  0x40   : > { %p553_p3 = pnand %p551_p11, %p507_p1  ;;  %p559_p0 = scmp.lt.s32.totalorder %s557_s16, %s550_s25 }
  0x42   : > { %p554_p8 = pneg %p553_p3  ;;  %p560_p2 = por %p559_p0, %p558_p6 }
  0x44   : > { %p561_p4 = pnand %p560_p2, %p554_p8 }
  0x46   : > { %564 = shalt.err (!%p561_p4)
}
  0x47   : > { %452 = dma.hbm_to_vmem [thread:$0]  (!%p741_p13), %s789_s14, 128, %s793_s17, %s139_s28, %s638_s29, %s638_s29, %s639_s5  }
  0x48   : > { %161 = sbr.rel (%p780_p12) target bundleno = 807 (0x327), region = 28  ;;  %s827_s30 = sand.u32 (!%p780_p12), 1, %s627_s10  }
  0x49   : > { %s423_s4 = sshll.u32 (!%p780_p12), %s827_s30, 3  ;;  %s164_s19 = scalar_lea.sflag (!%p780_p12), [#allocation3], %s827_s30 }
  0x4a   : > { %s167_s3 = scalar_lea.vmem (!%p780_p12), [#allocation2], %s423_s4  ;;  %p900_p6 = scmp.ne.s32.totalorder (!%p780_p12), %s895_s20, 0 }
  0x4f   : > { %610 = dma.done.wait (%p900_p6), %s164_s19, 128  }
  0x50   : > { %612 = vsyncadd (%p900_p6), %s164_s19, 4294967168  ;;  %s173_s23 = scalar_lea.sflag [#allocation6], %s827_s30  ;;  %s176_s29 = scalar_lea.vmem [#allocation5], %s423_s4 }
  0x51   : > { %614 = dma.done.wait (%p900_p6), %s173_s23, 128  }
  0x52   : > { %616 = vsyncadd (%p900_p6), %s173_s23, 4294967168  ;;  %v641_v0 = vmov 0.0   ;;  %vm642_vm0 = vmmov 0   ;;  %v503_v1 = vld [vmem:[%s167_s3] sm:$0xff]   ;;  %v504_v2 = vld [vmem:[%s176_s29] sm:$0xff]   ;;  %s643_s5 = smov 120  }
  0x53   : > { %434 = vmatprep.subr.bf16.mxu0 %v641_v0  ;;  %436 = vmatprep.mubr.msk.bf16.mxu0 %vm642_vm0, %v641_v0  ;;  %s644_s6 = smov 8   ;;  %vm266_vm1 = vcmask 64512   ;;  %s645_s20 = smov 124   ;;  %vm276_vm2 = vcmask 97280   ;;  %vm289_vm3 = vcmask 113664   ;;  %vm302_vm4 = vcmask 121856  }
  0x54   : > { %435 = vmatpush3.bf16.xpose.msra.mxu0 %v503_v1  ;;  %s646_s14 = smov 12   ;;  %s647_s17 = smov 14   ;;  %vm309_vm5 = vcmask 122880  }
  0x55   : > { %s648_s28 = smov 126   ;;  %s649_s24 = smov 15  }
  0x56   : > { %s650_s26 = smov 127   ;;  %s427_s27 = sshll.u32 %s688_s13, 4 }
  0x57   : > { %s200_s25 = scalar_lea.vmem [#allocation7], %s827_s30  ;;  %s845_s4 = scalar_lea.hbm %s891_s2, %s427_s27 }
  0x58   : > { %s324_s7 = sshll.u32 %s200_s25, 4  ;;  %s312_s19 = scalar_lea.sflag [#allocation4], %s827_s30  ;;  %s847_s7 = int_to_ptr.vmem [resolvable:$true] %s324_s7 }
  0x59   : > { %s565_s3 = scalar_lea.vmem %s847_s7, 16  ;;  %p901_p1 = scmp.ne.s32.totalorder %s896_s21, 0 }
  0x5a   : > { %p566_p13 = scmp.ne.s32.totalorder %s847_s7, %s565_s3  ;;  %s651_s13 = smov [#allocation7]  }
  0x5b   : > { %437 = vmatmul.mubr.bf16.vlgmr.msra.gmra.mrb[0].mxu0 %v504_v2  ;;  %s569_s23 = sshll.u32 %s651_s13, 4  ;;  %s570_s23 = int_to_ptr.vmem [resolvable:$false] %s569_s23 }
  0x5c   : > { %p567_p12 = pnand %p566_p13, %p901_p1  ;;  %s571_s29 = scalar_lea.vmem %s570_s23, 32 }
  0x5d   : > { %p572_p5 = scmp.lt.s32.totalorder %s847_s7, %s570_s23  ;;  %p573_p7 = scmp.lt.s32.totalorder %s571_s29, %s565_s3 }
  0x5e   : > { %p568_p10 = pneg %p567_p12 }
  0x5f   : > { %p574_p9 = por %p573_p7, %p572_p5 }
  0x61   : > { %p575_p11 = pnand %p574_p9, %p568_p10 }
 0x12e   : > { %v252_v3 = vpop.f32.mrb[0].mxu0 }
 0x12f   : > { %v438_v4 = vpop.f32.mrb[1].mxu0 }
 0x130   : > { %v255_v5 = vpop.f32.mrb[2].mxu0 }
 0x131   : > { %260 = vrot.lane.b32.xlu0 %v255_v5, %s643_s5  ;;  %v439_v6 = vpop.f32.mrb[3].mxu0 }
 0x135   : > { %263 = vrot.lane.b32.xlu0 %v255_v5, %s644_s6 }
 0x1a3   : > { %v261_v7 = vpop.permute.xlu0 %260 }
 0x1a7   : > { %v264_v8 = vpop.permute.xlu0 %263 }
 0x1a8   : > { %v267_v9 = vsel %vm266_vm1, %v261_v7, %v264_v8 }
 0x1a9   : > { %v268_v10 = vadd.f32 %v267_v9, %v252_v3 }
 0x1ab   : > { %270 = vrot.lane.b32.xlu1 %v268_v10, %s645_s20 }
 0x1af   : > { %273 = vrot.lane.b32.xlu1 %v268_v10, %s646_s14 }
 0x21d   : > { %v271_v11 = vpop.permute.xlu1 %270 }
 0x221   : > { %v274_v12 = vpop.permute.xlu1 %273 }
 0x222   : > { %v277_v13 = vsel %vm276_vm2, %v271_v11, %v274_v12 }
 0x223   : > { %v279_v14 = vrot.slane %v277_v13, 4 }
 0x225   : > { %v281_v15 = vadd.f32 %v279_v14, %v268_v10 }
 0x227   : > { %286 = vrot.lane.b32.xlu1 %v281_v15, %s647_s17  ;;  %283 = vrot.lane.b32.xlu0 %v281_v15, %s648_s28 }
 0x299   : > { %v287_v16 = vpop.permute.xlu1 %286  ;;  %v284_v17 = vpop.permute.xlu0 %283 }
 0x29a   : > { %v290_v18 = vsel %vm289_vm3, %v284_v17, %v287_v16 }
 0x29b   : > { %v292_v19 = vrot.slane %v290_v18, 2 }
 0x29d   : > { %v294_v20 = vadd.f32 %v292_v19, %v281_v15 }
 0x29f   : > { %299 = vrot.lane.b32.xlu1 %v294_v20, %s649_s24  ;;  %296 = vrot.lane.b32.xlu0 %v294_v20, %s650_s26 }
 0x311   : > { %v300_v21 = vpop.permute.xlu1 %299  ;;  %v297_v22 = vpop.permute.xlu0 %296 }
 0x312   : > { %v303_v23 = vsel %vm302_vm4, %v297_v22, %v300_v21 }
 0x313   : > { %v305_v24 = vrot.slane %v303_v23, 1 }
 0x315   : > { %v307_v25 = vadd.f32 %v305_v24, %v294_v20 }
 0x317   : > { %v308_v26 = vmul.f32 0.0078125, %v307_v25 }
 0x319   : > { %310 = vst.msk [vmem:[%s200_s25] sm:$0x1] %vm309_vm5, %v308_v26 }
 0x31a   : > { %578 = shalt.err (!%p575_p11)
}
 0x31b   : > { %s579_s30 = scalar_lea.hbm %s845_s4, 16  ;;  %s583_s20 = scalar_lea.hbm %s891_s2, 32 }
 0x31c   : > { %p580_p3 = scmp.ne.s32.totalorder %s845_s4, %s579_s30  ;;  %p584_p2 = scmp.lt.u32.totalorder %s845_s4, %s891_s2 }
 0x31d   : > { %p585_p4 = scmp.lt.u32.totalorder %s583_s20, %s579_s30  ;;  %p587_p13 = scmp.lt.u32.totalorder %s579_s30, %s845_s4 }
 0x31e   : > { %p581_p8 = pnand %p580_p3, %p901_p1 }
 0x31f   : > { %p586_p6 = por %p585_p4, %p584_p2 }
 0x320   : > { %p582_p0 = pneg %p581_p8 }
 0x321   : > { %p588_p12 = por %p587_p13, %p586_p6 }
 0x323   : > { %p589_p10 = pnand %p588_p12, %p582_p0 }
 0x325   : > { %592 = shalt.err (!%p589_p10)
}
 0x326   : > { %444 = dma.vmem_to_hbm [thread:$0]  (%p901_p1), %s847_s7, 16, %s845_s4, %s312_s19  }
 0x327 PF: > { %s336_s28 = sand.u32 1, %s623_s9   ;;  %p902_p5 = scmp.ne.s32.totalorder %s897_s22, 0 }
 0x328   : > { %p903_p7 = scmp.ge.s32.totalorder %s635_s12, 2  ;;  %s337_s24 = scalar_lea.sflag [#allocation4], %s336_s28 }
 0x32a   : > { %p454_p9 = pnand %p903_p7, %p902_p5 }
 0x32c   : > { %618 = dma.done.wait (!%p454_p9), %s337_s24, 16  }
 0x32d   : > { %620 = vsyncadd (!%p454_p9), %s337_s24, 4294967280  ;;  %p18_p11 = scmp.ge.s32.totalorder %s692_s15, 4   ;;  %s904_s9 = smov %s627_s10 }
 0x32e   : > { %s905_s10 = smov %s631_s11  ;;  %s906_s11 = smov %s704_s18 }
 0x32f   : > { %s907_s12 = smov %s692_s15  ;;  %20 = sbr.rel (!%p18_p11) target bundleno = 7 (0x7), region = 86 }
 0x336   :  { %341 = vsyncpa [#allocation3], 1 }
 0x337   :  { %343 = vsyncpa [#allocation3 + $0x1], 1 }
 0x338   :  { %344 = vsyncpa [#allocation6], 1 }
 0x339   :  { %346 = vsyncpa [#allocation6 + $0x1], 1 }
 0x33a   :  { %347 = vsyncpa [#allocation4], 1 }
 0x33b   :  { %349 = vsyncpa [#allocation4 + $0x1], 1 }

</bundles_post_ra>
